<compile_context>
chip_gen: v5e
topology: v5e:2x2
jax: 0.10.0
libtpu: 0.0.40
codegen_flags: <defaults>
</compile_context>

<pallas_src>
import functools

import jax
import jax.numpy as jnp
from jax.experimental import pallas as pl
from jax.experimental.pallas import tpu as pltpu


def _dice_partials_kernel(yhat_ref, y_ref, out_ref, *, num_classes, tile_len, hw_valid):
    """Per-(batch, spatial-tile) partial sums for hard multi-class Dice.

    yhat_ref: (1, C, TL)  logits block                (VMEM)
    y_ref:    (1, 1, TL)  int32 label block           (VMEM)
    out_ref:  (1, 1, C, 3) int32 partials:
              [:, :, c, 0] = |pred==c  &  y==c|
              [:, :, c, 1] = |pred==c|
              [:, :, c, 2] = |y==c|
    """
    t = pl.program_id(1)

    logits = yhat_ref[0]            # (C, TL)
    labels = y_ref[0]               # (1, TL) int32

    # Fused running argmax over the channel axis (strict '>' keeps the same
    # first-max tie-breaking as argmax).
    best_val = logits[0:1, :]                              # (1, TL)
    best_idx = jnp.zeros((1, tile_len), jnp.int32)         # (1, TL)
    for c in range(1, num_classes):
        row = logits[c:c + 1, :]
        take = row > best_val
        best_val = jnp.where(take, row, best_val)
        best_idx = jnp.where(take, jnp.int32(c), best_idx)

    # Reference module sets only channels 1 and 2 from the argmax and folds
    # everything else into class 0 (identity for num_classes == 3).
    preds = jnp.where((best_idx == 1) | (best_idx == 2), best_idx, 0)

    # Mask out padded spatial positions.
    pos = t * tile_len + jax.lax.broadcasted_iota(jnp.int32, (1, tile_len), 1)
    valid = pos < hw_valid                                 # (1, TL) bool

    cls = jax.lax.broadcasted_iota(jnp.int32, (num_classes, 1), 0)   # (C, 1)
    pred_oh = (preds == cls) & valid                       # (C, TL) bool
    targ_oh = (labels == cls) & valid                      # (C, TL) bool

    # Per-tile counts <= TL <= 8192, exact in f32; cast to int32 so the
    # wrapper-side grand total stays exact for arbitrarily large images.
    inter = jnp.sum((pred_oh & targ_oh).astype(jnp.float32), axis=-1, keepdims=True)
    pcnt = jnp.sum(pred_oh.astype(jnp.float32), axis=-1, keepdims=True)
    tcnt = jnp.sum(targ_oh.astype(jnp.float32), axis=-1, keepdims=True)

    out_ref[0, 0, :, :] = jnp.concatenate([inter, pcnt, tcnt], axis=-1).astype(jnp.int32)


def dice_score(yhat: jax.Array, y: jax.Array, *, num_classes: int = 3,
               eps: float = 1e-7, max_tile: int = 8192) -> jax.Array:
    """Multi-class hard Dice score. yhat: (N, C, H, W) logits; y: (N, H, W) int labels.

    Returns a JAX f32 scalar (caller decides when to sync/convert to float).
    """
    N, C, H, W = yhat.shape
    assert C == num_classes and num_classes >= 2, "only the multi-class path is implemented"
    assert y.shape in ((N, H, W), (N, 1, H, W))
    y = y.reshape(N, H, W)
    HW = H * W

    def round_up(a, b):
        return (a + b - 1) // b * b

    tile = min(max_tile, round_up(HW, 128))     # lane-dense, multiple of 128
    hw_pad = round_up(HW, tile)
    n_tiles = hw_pad // tile

    yhat_f = yhat.reshape(N, C, HW)
    y_f = y.reshape(N, 1, HW).astype(jnp.int32)
    if hw_pad != HW:
        yhat_f = jnp.pad(yhat_f, ((0, 0), (0, 0), (0, hw_pad - HW)))
        y_f = jnp.pad(y_f, ((0, 0), (0, 0), (0, hw_pad - HW)), constant_values=-1)

    kernel = functools.partial(
        _dice_partials_kernel, num_classes=C, tile_len=tile, hw_valid=HW)

    partials = pl.pallas_call(
        kernel,
        out_shape=jax.ShapeDtypeStruct((N, n_tiles, C, 3), jnp.int32),
        grid=(N, n_tiles),
        in_specs=[
            pl.BlockSpec((1, C, tile), lambda n, t: (n, 0, t)),
            pl.BlockSpec((1, 1, tile), lambda n, t: (n, 0, t)),
        ],
        out_specs=pl.BlockSpec((1, 1, C, 3), lambda n, t: (n, t, 0, 0)),
        compiler_params=pltpu.CompilerParams(
            dimension_semantics=("parallel", "parallel"),
        ),
    )(yhat_f, y_f)

    totals = jnp.sum(partials, axis=(0, 1))                 # (C, 3), exact int32
    inter = totals[:, 0].astype(jnp.float32)
    card = (totals[:, 1] + totals[:, 2]).astype(jnp.float32)
    dice = jnp.mean(2.0 * inter / (card + jnp.float32(eps)))
    return dice


def _dice_ref(yhat, y, eps=1e-7):
    """Pure-JAX reference mirroring the intended PyTorch forward."""
    N, C, H, W = yhat.shape
    preds = jnp.argmax(yhat, axis=1)
    preds = jnp.where((preds == 1) | (preds == 2), preds, 0)
    pred_oh = jax.nn.one_hot(preds, C, axis=1, dtype=jnp.float32)
    targ_oh = jax.nn.one_hot(y, C, axis=1, dtype=jnp.float32)
    inter = jnp.sum(pred_oh * targ_oh, axis=(0, 2, 3))
    card = jnp.sum(pred_oh + targ_oh, axis=(0, 2, 3))
    return jnp.mean(2.0 * inter / (card + eps))


if __name__ == "__main__":
    key = jax.random.PRNGKey(0)

    # Case 1: small shapes, HW already lane-aligned (no padding path).
    N, C, H, W = 2, 3, 16, 16
    k1, k2, k3, k4 = jax.random.split(key, 4)
    yhat = jax.random.normal(k1, (N, C, H, W), dtype=jnp.float32)
    y = jax.random.randint(k2, (N, H, W), 0, C, dtype=jnp.int32)

    d_kernel = jax.block_until_ready(dice_score(yhat, y, num_classes=C))
    d_ref = _dice_ref(yhat, y)
    assert abs(float(d_kernel) - float(d_ref)) < 1e-6, (float(d_kernel), float(d_ref))

    # Case 2: non-128-aligned spatial size exercises the padding/mask path.
    H2 = W2 = 20
    yhat2 = jax.random.normal(k3, (N, C, H2, W2), dtype=jnp.float32)
    y2 = jax.random.randint(k4, (N, H2, W2), 0, C, dtype=jnp.int32)

    d_kernel2 = jax.block_until_ready(dice_score(yhat2, y2, num_classes=C))
    d_ref2 = _dice_ref(yhat2, y2)
    assert abs(float(d_kernel2) - float(d_ref2)) < 1e-6, (float(d_kernel2), float(d_ref2))

    print("KERNEL_OK")
</pallas_src>

<mosaic_0001>
module attributes {stable_mosaic.version = 11 : i64} {
  func.func @_dice_partials_kernel(%arg0: i32, %arg1: i32, %arg2: memref<1x3x256xf32, #tpu.memory_space<vmem>>, %arg3: memref<1x1x256xi32, #tpu.memory_space<vmem>>, %arg4: memref<1x1x3x3xi32, #tpu.memory_space<vmem>>) attributes {dimension_semantics = [#tpu.dimension_semantics<parallel>, #tpu.dimension_semantics<parallel>], iteration_bounds = array<i64: 2, 1>, scalar_prefetch = 0 : i64, scratch_operands = 0 : i64, tpu.core_type = #tpu.core_type<tc>, window_params = [{transform_indices = @transform_0, window_bounds = array<i64: 1, 3, 256>}, {transform_indices = @transform_1, window_bounds = array<i64: 1, 1, 256>}, {transform_indices = @transform_2, window_bounds = array<i64: 1, 1, 3, 3>}]} {
    %c0 = arith.constant 0 : index
    %c0_0 = arith.constant 0 : index
    %c0_1 = arith.constant 0 : index
    %0 = vector.load %arg2[%c0, %c0_0, %c0_1] : memref<1x3x256xf32, #tpu.memory_space<vmem>>, vector<1x3x256xf32>
    %1 = vector.shape_cast %0 : vector<1x3x256xf32> to vector<3x256xf32>
    %c0_2 = arith.constant 0 : index
    %c0_3 = arith.constant 0 : index
    %c0_4 = arith.constant 0 : index
    %2 = vector.load %arg3[%c0_2, %c0_3, %c0_4] : memref<1x1x256xi32, #tpu.memory_space<vmem>>, vector<1x1x256xi32>
    %3 = vector.shape_cast %2 : vector<1x1x256xi32> to vector<1x256xi32>
    %4 = vector.extract_strided_slice %1 {offsets = [0, 0], sizes = [1, 256], strides = [1, 1]} : vector<3x256xf32> to vector<1x256xf32>
    %c0_i32 = arith.constant 0 : i32
    %5 = vector.broadcast %c0_i32 : i32 to vector<1x256xi32>
    %6 = vector.extract_strided_slice %1 {offsets = [1, 0], sizes = [1, 256], strides = [1, 1]} : vector<3x256xf32> to vector<1x256xf32>
    %7 = arith.cmpf ogt, %6, %4 : vector<1x256xf32>
    %8 = arith.select %7, %6, %4 : vector<1x256xi1>, vector<1x256xf32>
    %c1_i32 = arith.constant 1 : i32
    %9 = vector.broadcast %c1_i32 : i32 to vector<1x256xi32>
    %10 = arith.select %7, %9, %5 : vector<1x256xi1>, vector<1x256xi32>
    %11 = vector.extract_strided_slice %1 {offsets = [2, 0], sizes = [1, 256], strides = [1, 1]} : vector<3x256xf32> to vector<1x256xf32>
    %12 = arith.cmpf ogt, %11, %8 : vector<1x256xf32>
    %c2_i32 = arith.constant 2 : i32
    %13 = vector.broadcast %c2_i32 : i32 to vector<1x256xi32>
    %14 = arith.select %12, %13, %10 : vector<1x256xi1>, vector<1x256xi32>
    %c1_i32_5 = arith.constant 1 : i32
    %15 = vector.broadcast %c1_i32_5 : i32 to vector<1x256xi32>
    %16 = arith.cmpi eq, %14, %15 : vector<1x256xi32>
    %c2_i32_6 = arith.constant 2 : i32
    %17 = vector.broadcast %c2_i32_6 : i32 to vector<1x256xi32>
    %18 = arith.cmpi eq, %14, %17 : vector<1x256xi32>
    %19 = arith.ori %16, %18 : vector<1x256xi1>
    %c0_i32_7 = arith.constant 0 : i32
    %20 = vector.broadcast %c0_i32_7 : i32 to vector<1x256xi32>
    %21 = arith.select %19, %14, %20 : vector<1x256xi1>, vector<1x256xi32>
    %c256_i32 = arith.constant 256 : i32
    %22 = arith.muli %arg1, %c256_i32 : i32
    %23 = tpu.iota {dimensions = array<i32: 1>} : vector<1x256xi32>
    %24 = vector.broadcast %22 : i32 to vector<1x256xi32>
    %25 = arith.addi %24, %23 : vector<1x256xi32>
    %c256_i32_8 = arith.constant 256 : i32
    %26 = vector.broadcast %c256_i32_8 : i32 to vector<1x256xi32>
    %27 = arith.cmpi slt, %25, %26 : vector<1x256xi32>
    %28 = tpu.iota {dimensions = array<i32: 0>} : vector<3x1xi32>
    %29 = vector.broadcast %21 : vector<1x256xi32> to vector<3x256xi32>
    %30 = vector.broadcast %28 : vector<3x1xi32> to vector<3x256xi32>
    %31 = arith.cmpi eq, %29, %30 : vector<3x256xi32>
    %32 = vector.broadcast %27 : vector<1x256xi1> to vector<3x256xi1>
    %33 = arith.andi %31, %32 : vector<3x256xi1>
    %34 = vector.broadcast %3 : vector<1x256xi32> to vector<3x256xi32>
    %35 = vector.broadcast %28 : vector<3x1xi32> to vector<3x256xi32>
    %36 = arith.cmpi eq, %34, %35 : vector<3x256xi32>
    %37 = vector.broadcast %27 : vector<1x256xi1> to vector<3x256xi1>
    %38 = arith.andi %36, %37 : vector<3x256xi1>
    %39 = arith.andi %33, %38 : vector<3x256xi1>
    %40 = arith.extui %39 : vector<3x256xi1> to vector<3x256xi32>
    %41 = arith.sitofp %40 : vector<3x256xi32> to vector<3x256xf32>
    %cst = arith.constant dense<0.000000e+00> : vector<3xf32>
    %42 = vector.multi_reduction <add>, %41, %cst [1] : vector<3x256xf32> to vector<3xf32>
    %43 = vector.shape_cast %42 : vector<3xf32> to vector<3x1xf32>
    %44 = arith.extui %33 : vector<3x256xi1> to vector<3x256xi32>
    %45 = arith.sitofp %44 : vector<3x256xi32> to vector<3x256xf32>
    %cst_9 = arith.constant dense<0.000000e+00> : vector<3xf32>
    %46 = vector.multi_reduction <add>, %45, %cst_9 [1] : vector<3x256xf32> to vector<3xf32>
    %47 = vector.shape_cast %46 : vector<3xf32> to vector<3x1xf32>
    %48 = arith.extui %38 : vector<3x256xi1> to vector<3x256xi32>
    %49 = arith.sitofp %48 : vector<3x256xi32> to vector<3x256xf32>
    %cst_10 = arith.constant dense<0.000000e+00> : vector<3xf32>
    %50 = vector.multi_reduction <add>, %49, %cst_10 [1] : vector<3x256xf32> to vector<3xf32>
    %51 = vector.shape_cast %50 : vector<3xf32> to vector<3x1xf32>
    %52 = tpu.concatenate %43, %47, %51 in 1 : vector<3x1xf32>, vector<3x1xf32>, vector<3x1xf32> -> vector<3x3xf32>
    %53 = arith.fptosi %52 : vector<3x3xf32> to vector<3x3xi32>
    %c0_11 = arith.constant 0 : index
    %c0_12 = arith.constant 0 : index
    %c0_13 = arith.constant 0 : index
    %c0_14 = arith.constant 0 : index
    %54 = vector.load %arg4[%c0_11, %c0_12, %c0_13, %c0_14] : memref<1x1x3x3xi32, #tpu.memory_space<vmem>>, vector<1x1x3x3xi32>
    %55 = vector.shape_cast %54 : vector<1x1x3x3xi32> to vector<3x3xi32>
    %56 = vector.shape_cast %53 : vector<3x3xi32> to vector<1x1x3x3xi32>
    tpu.vector_store %arg4[%c0_11, %c0_12, %c0_13, %c0_14], %56 {strides = array<i32>} : memref<1x1x3x3xi32, #tpu.memory_space<vmem>>, vector<1x1x3x3xi32>,
    return
  }
  func.func @transform_0(%arg0: i32, %arg1: i32) -> (i32, i32, i32) {
    %c0_i32 = arith.constant 0 : i32
    %c0_i32_0 = arith.constant 0 : i32
    return %arg0, %c0_i32, %arg1 : i32, i32, i32
  }
  func.func @transform_1(%arg0: i32, %arg1: i32) -> (i32, i32, i32) {
    %c0_i32 = arith.constant 0 : i32
    %c0_i32_0 = arith.constant 0 : i32
    return %arg0, %c0_i32, %arg1 : i32, i32, i32
  }
  func.func @transform_2(%arg0: i32, %arg1: i32) -> (i32, i32, i32, i32) {
    %c0_i32 = arith.constant 0 : i32
    %c0_i32_0 = arith.constant 0 : i32
    %c0_i32_1 = arith.constant 0 : i32
    return %arg0, %arg1, %c0_i32, %c0_i32_0 : i32, i32, i32, i32
  }
}

</mosaic_0001>

<bundles_post_ra>
// kernel: tpu_custom_call.1
= control target key start
LH: loop header
LB: loop body
LE: loop exit
PB: predicated region body
PF: predicated region fallthrough
CT: control target
= control target key end

     0   :  { %s477_s9 = smov 0   ;;  %s479_s10 = smov 0   ;;  %s540_s0 = inlined_call_operand.vmem [shape: f32[2,3,256], index: 0, kind: input, shape index: {}]   ;;  %s541_s1 = inlined_call_operand.vmem [shape: s32[2,1,256], index: 1, kind: input, shape index: {}]   ;;  %s542_s2 = inlined_call_operand.vmem [shape: s32[2,1,3,3], index: 2, kind: output, shape index: {}]  }
   0x1   :  { %s481_s11 = smov 0  }
   0x2 LB: > { %s24_s12 = sadd.s32 1, %s454_s10  ;;  %p391_p0 = scmp.ge.s32.totalorder %s458_s11, 1  ;;  %s458_s11 = sphi %s481_s11, %s12_s11   ;;  %s454_s10 = sphi %s479_s10, %s548_s10   ;;  %s450_s9 = sphi %s477_s9, %s547_s9  }
   0x3   : > { %p26_p1 = scmp.ge.s32.totalorder %s24_s12, 2  ;;  %p149_p2 = scmp.lt.s32.totalorder %s458_s11, 3 }
   0x5   : > { %s550_s12 = smov (%p26_p1, %s24_s12), 0  ;;  %p150_p3 = pnand %p391_p0, %p149_p2 }
   0x6   : > { %p186_p4 = scmp.lt.s32.totalorder (!%p150_p3), %s450_s9, 1 }
   0x7   : > { %153 = sbr.rel (%p150_p3) target bundleno = 170 (0xaa), region = 28 }
   0xc   : > { %v238_v0 = vlaneseq  ;;  %s552_s9 = smov (!%p186_p4, %s450_s9), 1  ;;  %vm264_vm3 = vcmask 1042432   ;;  %v460_v10 = vmov 0   ;;  %v461_v12 = vmov 0.0  }
   0xd   : > { %s404_s13 = sshll.u32 %s552_s9, 3  ;;  %s394_s14 = sshll.u32 %s552_s9, 1  ;;  %vm288_vm12 = vcmask 7168   ;;  %vm290_vm13 = vcmask 15360   ;;  %vm293_vm15 = vcmask 18432  }
   0xe   : > { %s193_s17 = scalar_lea.vmem %s540_s0, %s404_s13  ;;  %s202_s20 = scalar_lea.vmem %s541_s1, %s394_s14  ;;  %v239_v1 = vshrl.u32 %v238_v0, 7 }
   0xf   : > { %v211_v2 = vld [vmem:[%s193_s17] sm:$0x77]  ;;  %s395_s21 = sshll.u32 %s552_s9, 2 }
  0x10   : > { %v212_v3 = vld [vmem:[%s202_s20] sm:$0x3]  ;;  %v214_v4 = vrot.slane %v211_v2, 7  ;;  %s210_s24 = scalar_lea.vmem %s542_s2, %s395_s21 }
  0x11   : > { %v252_v5 = vperm.slane %v212_v3, 0  ;;  %v253_v6 = vperm.slane %v212_v3, 1 }
  0x12   : > { %vm216_vm0 = vcmp.gt.f32.partialorder %v211_v2, %v214_v4 }
  0x13   : > { %vm505_vm1 = vcmp.eq.s32.totalorder %v252_v5, %v239_v1  ;;  %vm509_vm2 = vcmp.eq.s32.totalorder %v253_v6, %v239_v1  ;;  %v217_v9 = vsel %vm216_vm0, %v211_v2, %v214_v4  ;;  %v218_v11 = vsel %vm216_vm0, 1, %v460_v10 }
  0x14   : > { %v400_v13 = vsel %vm505_vm1, 1.0, %v461_v12  ;;  %v401_v14 = vsel %vm509_vm2, 1.0, %v461_v12  ;;  %v220_v15 = vrot.slane %v217_v9, 7  ;;  %v223_v16 = vrot.slane %v218_v11, 7 }
  0x15   : > { %v283_v17 = vsel %vm264_vm3, %v400_v13, 0.0  ;;  %v284_v18 = vsel %vm264_vm3, %v401_v14, 0.0 }
  0x16   : > { %v285_v19 = vadd.f32 %v284_v18, %v283_v17  ;;  %vm222_vm4 = vcmp.gt.f32.partialorder %v211_v2, %v220_v15 }
  0x17   : > { %v224_v20 = vsel %vm222_vm4, 2, %v223_v16 }
  0x18   : > { %286 = vadd.xlane.f32.xlu1 %v285_v19  ;;  %vm225_vm5 = vcmp.eq.s32.totalorder %v224_v20, 1  ;;  %vm226_vm6 = vcmp.eq.s32.totalorder %v224_v20, 2 }
  0x19   : > { %vm227_vm7 = vmor %vm225_vm5, %vm226_vm6 }
  0x1a   : > { %v228_v21 = vsel %vm227_vm7, %v224_v20, 0 }
  0x1b   : > { %v240_v22 = vperm.slane %v228_v21, 2  ;;  %v241_v23 = vperm.slane %v228_v21, 6 }
  0x1d   : > { %v242_v24 = vperm.slane %v240_v22, 2  ;;  %v243_v25 = vperm.slane %v241_v23, 2 }
  0x1f   : > { %vm244_vm8 = vcmp.eq.s32.totalorder %v242_v24, %v239_v1  ;;  %vm245_vm9 = vcmp.eq.s32.totalorder %v243_v25, %v239_v1 }
  0x20   : > { %vm258_vm10 = vmand %vm244_vm8, %vm505_vm1  ;;  %v398_v31 = vsel %vm244_vm8, 1.0, %v461_v12  ;;  %v399_v32 = vsel %vm245_vm9, 1.0, %v461_v12 }
  0x21   : > { %vm259_vm11 = vmand %vm245_vm9, %vm509_vm2  ;;  %v396_v26 = vsel %vm258_vm10, 1.0, %v461_v12  ;;  %v274_v33 = vsel %vm264_vm3, %v398_v31, 0.0  ;;  %v275_v34 = vsel %vm264_vm3, %v399_v32, 0.0 }
  0x22   : > { %v397_v27 = vsel %vm259_vm11, 1.0, %v461_v12  ;;  %v265_v28 = vsel %vm264_vm3, %v396_v26, 0.0  ;;  %v276_v35 = vadd.f32 %v275_v34, %v274_v33 }
  0x23   : > { %v266_v29 = vsel %vm264_vm3, %v397_v27, 0.0 }
  0x24   : > { %v267_v30 = vadd.f32 %v266_v29, %v265_v28 }
  0x26   : > { %268 = vadd.xlane.f32.xlu0 %v267_v30 }
  0x2e   : > { %277 = vadd.xlane.f32.xlu0 %v276_v35 }
  0x8b   : > { %v287_v37 = vpop.xlane.xlu1 %286 }
  0x99   : > { %v269_v36 = vpop.xlane.xlu0 %268 }
  0xa1   : > { %v278_v38 = vpop.xlane.xlu0 %277 }
  0xa2   : > { %v289_v39 = vsel %vm288_vm12, %v269_v36, %v278_v38 }
  0xa3   : > { %v291_v40 = vsel %vm290_vm13, %v289_v39, %v287_v37 }
  0xa4   : > { %vm405_vm14 = vcmp.lt.s32.totalorder %v291_v40, 0  ;;  %v406_v41 = vceil.f32 %v291_v40  ;;  %v407_v42 = vfloor.f32 %v291_v40 }
  0xa6   : > { %v408_v43 = vsel %vm405_vm14, %v406_v41, %v407_v42 }
  0xa7   : > { %v409_v44 = vcvt.f32.s32 %v408_v43 }
  0xa9   : > { %294 = vst.msk [vmem:[%s210_s24] sm:$0x7] %vm293_vm15, %v409_v44 }
  0xaa PF: > { %s12_s11 = sadd.s32 1, %s458_s11   ;;  %s547_s9 = smov %s454_s10 }
  0xab   : > { %p9_p5 = scmp.ge.s32.totalorder %s12_s11, 4   ;;  %s548_s10 = smov %s550_s12 }
  0xad   :  { %11 = sbr.rel (!%p9_p5) target bundleno = 2 (0x2), region = 61 }

</bundles_post_ra>
